<compile_context>
chip_gen: v7x
topology: tpu7x:2x2x1
jax: 0.10.0
libtpu: 0.0.40
codegen_flags: <defaults>
</compile_context>

<pallas_src>
import jax
import jax.numpy as jnp
from jax.experimental import pallas as pl
from jax.experimental.pallas import tpu as pltpu


def _round_up(v, m):
    return ((v + m - 1) // m) * m


def _block2hop_kernel(x_ref, adj_ref, invdeg_ref, selfw_ref,
                      w1_ref, b1_ref, w2_ref, b2_ref, o_ref):
    # Per-step tiles: x (Bt,N,Cin) f32, adj (Bt,N,N) bf16, inv_deg/selfw
    # (Bt,N,1) f32, weights/biases full (padded), out (Bt,N,Op) f32.
    bt = x_ref.shape[0]
    w1 = w1_ref[...]
    b1 = b1_ref[...]          # (1, Hp) — broadcasts over rows
    w2 = w2_ref[...]
    b2 = b2_ref[...]          # (1, Op)

    def sage(adj, inv_deg, selfw, h, w, b):
        cin, cout = w.shape
        if cin > cout:
            # Project down first: fewer MXU columns on the dominant adj matmul.
            g = jnp.dot(h, w, preferred_element_type=jnp.float32)
            pre = (jnp.dot(adj, g, preferred_element_type=jnp.float32) * inv_deg
                   + selfw * g)
        else:
            m = (jnp.dot(adj, h, preferred_element_type=jnp.float32) * inv_deg
                 + selfw * h)
            pre = jnp.dot(m, w, preferred_element_type=jnp.float32)
        out = jnp.maximum(pre + b, 0.0)                      # ReLU
        # F.normalize(p=2, dim=-1): x / max(||x||, 1e-12) == x * rsqrt(max(ss, 1e-24))
        ss = jnp.sum(out * out, axis=-1, keepdims=True)
        return out * jax.lax.rsqrt(jnp.maximum(ss, 1e-24))

    # Statically unrolled loop over the (small) per-step batch tile.
    for t in range(bt):
        adj = adj_ref[t].astype(jnp.float32)   # one upcast, reused by both hops
        inv_deg = invdeg_ref[t]                # (N, 1)
        selfw = selfw_ref[t]                   # (N, 1)
        x1 = sage(adj, inv_deg, selfw, x_ref[t], w1, b1)
        o_ref[t] = sage(adj, inv_deg, selfw, x1, w2, b2)


def block_2hop(x, adj, w1, b1, w2, b2, *, bt=None,
               adj_compute_dtype=jnp.bfloat16,
               vmem_limit_bytes=48 * 1024 * 1024):
    B, N, Cin = x.shape
    H = w1.shape[1]
    O = w2.shape[1]
    Hp = _round_up(H, 128)
    Op = _round_up(O, 128)

    x = x.astype(jnp.float32)
    adj = adj.astype(jnp.float32)

    # Per-row quantities of the self-loop-corrected adjacency, computed once in
    # the wrapper so the kernel never materializes a modified (N,N) adj copy.
    #   adj'@h = adj@h + (1 - diag(adj)) * h ;  deg = rowsum(adj) - diag + 1
    diag = jnp.diagonal(adj, axis1=-2, axis2=-1)                  # (B, N)
    deg = jnp.maximum(jnp.sum(adj, axis=-1) - diag + 1.0, 1.0)    # clamp(min=1)
    inv_deg = (1.0 / deg)[..., None]                              # (B, N, 1)
    selfw = ((1.0 - diag) / deg)[..., None]                       # (B, N, 1)

    # 0/1 adjacency is exact in bf16; halves the dominant HBM stream.
    adj_k = adj.astype(adj_compute_dtype)

    # Zero-pad hidden/output widths to full 128-lane multiples (lane-dense MXU
    # passes and output stores). Padded channels are exactly zero end-to-end.
    w1p = jnp.pad(w1.astype(jnp.float32), ((0, 0), (0, Hp - H)))
    b1p = jnp.pad(b1.astype(jnp.float32), (0, Hp - H)).reshape(1, Hp)
    w2p = jnp.pad(w2.astype(jnp.float32), ((0, Hp - H), (0, Op - O)))
    b2p = jnp.pad(b2.astype(jnp.float32), (0, Op - O)).reshape(1, Op)

    if bt is None:
        # Amortize ~0.35us/step pipeline overhead for tiny graphs, but keep
        # >= 2 grid steps when B allows it (v7x megacore splits the batch axis).
        per_batch = (N * N * jnp.dtype(adj_compute_dtype).itemsize
                     + N * (Cin + Hp + Op) * 4)
        budget = 4 * 1024 * 1024
        bt = max(1, min(max(1, B // 2), budget // max(per_batch, 1)))
        while B % bt:
            bt -= 1

    grid = (B // bt,)

    out = pl.pallas_call(
        _block2hop_kernel,
        out_shape=jax.ShapeDtypeStruct((B, N, Op), jnp.float32),
        grid_spec=pltpu.PrefetchScalarGridSpec(
            num_scalar_prefetch=0,
            grid=grid,
            in_specs=[
                pl.BlockSpec((bt, N, Cin), lambda i: (i, 0, 0)),
                pl.BlockSpec((bt, N, N), lambda i: (i, 0, 0)),
                pl.BlockSpec((bt, N, 1), lambda i: (i, 0, 0)),
                pl.BlockSpec((bt, N, 1), lambda i: (i, 0, 0)),
                pl.BlockSpec((Cin, Hp), lambda i: (0, 0)),
                pl.BlockSpec((1, Hp), lambda i: (0, 0)),
                pl.BlockSpec((Hp, Op), lambda i: (0, 0)),
                pl.BlockSpec((1, Op), lambda i: (0, 0)),
            ],
            out_specs=pl.BlockSpec((bt, N, Op), lambda i: (i, 0, 0)),
        ),
        compiler_params=pltpu.CompilerParams(
            dimension_semantics=("parallel",),
            vmem_limit_bytes=vmem_limit_bytes,
        ),
    )(x, adj_k, inv_deg, selfw, w1p, b1p, w2p, b2p)

    return out[..., :O]


def block_2hop_ref(x, adj, w1, b1, w2, b2):
    """Pure-JAX reference for verification (matches the PyTorch module)."""
    B, N, _ = adj.shape
    eye = jnp.eye(N, dtype=adj.dtype)
    adj = jnp.where(eye[None] > 0, 1.0, adj)
    deg = jnp.maximum(jnp.sum(adj, axis=-1, keepdims=True), 1.0)

    def sage(h, w, b):
        agg = jnp.einsum("bij,bjc->bic", adj, h) / deg
        out = jnp.einsum("bic,co->bio", agg, w) + b
        out = jax.nn.relu(out)
        nrm = jnp.sqrt(jnp.sum(out * out, axis=-1, keepdims=True))
        return out / jnp.maximum(nrm, 1e-12)

    x1 = sage(x, w1, b1)
    return sage(x1, w2, b2)


if __name__ == "__main__":
    B, N = 2, 16
    in_channels, hidden_channels, out_channels = 4, 32, 32

    key = jax.random.PRNGKey(0)
    kx, ka, kw1, kb1, kw2, kb2 = jax.random.split(key, 6)

    x = jax.random.normal(kx, (B, N, in_channels), dtype=jnp.float32)
    # random 0/1 adjacency (exact in bf16)
    adj = (jax.random.uniform(ka, (B, N, N)) > 0.7).astype(jnp.float32)

    # Deterministic parameter init (uniform in +/- 1/sqrt(fan_in), PyG-like).
    bnd1 = 1.0 / jnp.sqrt(in_channels)
    bnd2 = 1.0 / jnp.sqrt(hidden_channels)
    w1 = jax.random.uniform(kw1, (in_channels, hidden_channels),
                            minval=-bnd1, maxval=bnd1, dtype=jnp.float32)
    b1 = jax.random.uniform(kb1, (hidden_channels,),
                            minval=-bnd1, maxval=bnd1, dtype=jnp.float32)
    w2 = jax.random.uniform(kw2, (hidden_channels, out_channels),
                            minval=-bnd2, maxval=bnd2, dtype=jnp.float32)
    b2 = jax.random.uniform(kb2, (out_channels,),
                            minval=-bnd2, maxval=bnd2, dtype=jnp.float32)

    out = block_2hop(x, adj, w1, b1, w2, b2)
    out = jax.block_until_ready(out)

    ref = block_2hop_ref(x, adj, w1, b1, w2, b2)
    assert out.shape == (B, N, out_channels)
    assert jnp.allclose(out, ref, atol=5e-5, rtol=5e-5), (
        float(jnp.max(jnp.abs(out - ref))))

    print("KERNEL_OK")
</pallas_src>

<mosaic_0001>
module attributes {stable_mosaic.version = 11 : i64} {
  func.func @_block2hop_kernel(%arg0: i32, %arg1: memref<1x16x4xf32, #tpu.memory_space<vmem>>, %arg2: memref<1x16x16xbf16, #tpu.memory_space<vmem>>, %arg3: memref<1x16x1xf32, #tpu.memory_space<vmem>>, %arg4: memref<1x16x1xf32, #tpu.memory_space<vmem>>, %arg5: memref<4x128xf32, #tpu.memory_space<vmem>>, %arg6: memref<1x128xf32, #tpu.memory_space<vmem>>, %arg7: memref<128x128xf32, #tpu.memory_space<vmem>>, %arg8: memref<1x128xf32, #tpu.memory_space<vmem>>, %arg9: memref<1x16x128xf32, #tpu.memory_space<vmem>>) attributes {dimension_semantics = [#tpu.dimension_semantics<parallel>], iteration_bounds = array<i64: 2>, scalar_prefetch = 0 : i64, scratch_operands = 0 : i64, tpu.core_type = #tpu.core_type<tc>, window_params = [{transform_indices = @transform_0, window_bounds = array<i64: 1, 16, 4>}, {transform_indices = @transform_1, window_bounds = array<i64: 1, 16, 16>}, {transform_indices = @transform_2, window_bounds = array<i64: 1, 16, 1>}, {transform_indices = @transform_3, window_bounds = array<i64: 1, 16, 1>}, {pipeline_mode = #tpu.pipeline_mode<synchronous>, transform_indices = @transform_4, window_bounds = array<i64: 4, 128>}, {pipeline_mode = #tpu.pipeline_mode<synchronous>, transform_indices = @transform_5, window_bounds = array<i64: 1, 128>}, {pipeline_mode = #tpu.pipeline_mode<synchronous>, transform_indices = @transform_6, window_bounds = array<i64: 128, 128>}, {pipeline_mode = #tpu.pipeline_mode<synchronous>, transform_indices = @transform_7, window_bounds = array<i64: 1, 128>}, {transform_indices = @transform_8, window_bounds = array<i64: 1, 16, 128>}]} {
    %c0 = arith.constant 0 : index
    %c0_0 = arith.constant 0 : index
    %0 = vector.load %arg5[%c0, %c0_0] : memref<4x128xf32, #tpu.memory_space<vmem>>, vector<4x128xf32>
    %c0_1 = arith.constant 0 : index
    %c0_2 = arith.constant 0 : index
    %1 = vector.load %arg6[%c0_1, %c0_2] : memref<1x128xf32, #tpu.memory_space<vmem>>, vector<1x128xf32>
    %c0_3 = arith.constant 0 : index
    %c0_4 = arith.constant 0 : index
    %2 = vector.load %arg7[%c0_3, %c0_4] : memref<128x128xf32, #tpu.memory_space<vmem>>, vector<128x128xf32>
    %c0_5 = arith.constant 0 : index
    %c0_6 = arith.constant 0 : index
    %3 = vector.load %arg8[%c0_5, %c0_6] : memref<1x128xf32, #tpu.memory_space<vmem>>, vector<1x128xf32>
    %c0_7 = arith.constant 0 : index
    %c0_8 = arith.constant 0 : index
    %c0_9 = arith.constant 0 : index
    %4 = vector.load %arg2[%c0_7, %c0_8, %c0_9] : memref<1x16x16xbf16, #tpu.memory_space<vmem>>, vector<1x16x16xbf16>
    %5 = vector.shape_cast %4 : vector<1x16x16xbf16> to vector<16x16xbf16>
    %6 = arith.extf %5 : vector<16x16xbf16> to vector<16x16xf32>
    %c0_10 = arith.constant 0 : index
    %c0_11 = arith.constant 0 : index
    %c0_12 = arith.constant 0 : index
    %7 = vector.load %arg3[%c0_10, %c0_11, %c0_12] : memref<1x16x1xf32, #tpu.memory_space<vmem>>, vector<1x16x1xf32>
    %8 = vector.shape_cast %7 : vector<1x16x1xf32> to vector<16x1xf32>
    %c0_13 = arith.constant 0 : index
    %c0_14 = arith.constant 0 : index
    %c0_15 = arith.constant 0 : index
    %9 = vector.load %arg4[%c0_13, %c0_14, %c0_15] : memref<1x16x1xf32, #tpu.memory_space<vmem>>, vector<1x16x1xf32>
    %10 = vector.shape_cast %9 : vector<1x16x1xf32> to vector<16x1xf32>
    %c0_16 = arith.constant 0 : index
    %c0_17 = arith.constant 0 : index
    %c0_18 = arith.constant 0 : index
    %11 = vector.load %arg1[%c0_16, %c0_17, %c0_18] : memref<1x16x4xf32, #tpu.memory_space<vmem>>, vector<1x16x4xf32>
    %12 = vector.shape_cast %11 : vector<1x16x4xf32> to vector<16x4xf32>
    %cst = arith.constant dense<0.000000e+00> : vector<16x4xf32>
    %13 = tpu.matmul %6, %12, %cst {dimension_numbers = #tpu.dot_dimension_numbers<[1], [0], [0], [1], [0, 0, 1, 1], [], []>} : vector<16x16xf32>, vector<16x4xf32>, vector<16x4xf32> -> vector<16x4xf32>
    %14 = vector.broadcast %8 : vector<16x1xf32> to vector<16x4xf32>
    %15 = arith.mulf %13, %14 : vector<16x4xf32>
    %16 = vector.broadcast %10 : vector<16x1xf32> to vector<16x4xf32>
    %17 = arith.mulf %16, %12 : vector<16x4xf32>
    %18 = arith.addf %15, %17 : vector<16x4xf32>
    %cst_19 = arith.constant dense<0.000000e+00> : vector<16x128xf32>
    %19 = tpu.matmul %18, %0, %cst_19 {dimension_numbers = #tpu.dot_dimension_numbers<[1], [0], [0], [1], [0, 0, 1, 1], [], []>} : vector<16x4xf32>, vector<4x128xf32>, vector<16x128xf32> -> vector<16x128xf32>
    %20 = vector.broadcast %1 : vector<1x128xf32> to vector<16x128xf32>
    %21 = arith.addf %19, %20 : vector<16x128xf32>
    %cst_20 = arith.constant 0.000000e+00 : f32
    %22 = vector.broadcast %cst_20 : f32 to vector<16x128xf32>
    %23 = arith.maximumf %21, %22 : vector<16x128xf32>
    %24 = arith.mulf %23, %23 : vector<16x128xf32>
    %cst_21 = arith.constant dense<0.000000e+00> : vector<16xf32>
    %25 = vector.multi_reduction <add>, %24, %cst_21 [1] : vector<16x128xf32> to vector<16xf32>
    %26 = vector.shape_cast %25 : vector<16xf32> to vector<16x1xf32>
    %cst_22 = arith.constant 1.000000e-24 : f32
    %27 = vector.broadcast %cst_22 : f32 to vector<16x1xf32>
    %28 = arith.maximumf %26, %27 : vector<16x1xf32>
    %29 = math.rsqrt %28 : vector<16x1xf32>
    %30 = vector.broadcast %29 : vector<16x1xf32> to vector<16x128xf32>
    %31 = arith.mulf %23, %30 : vector<16x128xf32>
    %cst_23 = arith.constant dense<0.000000e+00> : vector<16x128xf32>
    %32 = tpu.matmul %6, %31, %cst_23 {dimension_numbers = #tpu.dot_dimension_numbers<[1], [0], [0], [1], [0, 0, 1, 1], [], []>} : vector<16x16xf32>, vector<16x128xf32>, vector<16x128xf32> -> vector<16x128xf32>
    %33 = vector.broadcast %8 : vector<16x1xf32> to vector<16x128xf32>
    %34 = arith.mulf %32, %33 : vector<16x128xf32>
    %35 = vector.broadcast %10 : vector<16x1xf32> to vector<16x128xf32>
    %36 = arith.mulf %35, %31 : vector<16x128xf32>
    %37 = arith.addf %34, %36 : vector<16x128xf32>
    %cst_24 = arith.constant dense<0.000000e+00> : vector<16x128xf32>
    %38 = tpu.matmul %37, %2, %cst_24 {dimension_numbers = #tpu.dot_dimension_numbers<[1], [0], [0], [1], [0, 0, 1, 1], [], []>} : vector<16x128xf32>, vector<128x128xf32>, vector<16x128xf32> -> vector<16x128xf32>
    %39 = vector.broadcast %3 : vector<1x128xf32> to vector<16x128xf32>
    %40 = arith.addf %38, %39 : vector<16x128xf32>
    %cst_25 = arith.constant 0.000000e+00 : f32
    %41 = vector.broadcast %cst_25 : f32 to vector<16x128xf32>
    %42 = arith.maximumf %40, %41 : vector<16x128xf32>
    %43 = arith.mulf %42, %42 : vector<16x128xf32>
    %cst_26 = arith.constant dense<0.000000e+00> : vector<16xf32>
    %44 = vector.multi_reduction <add>, %43, %cst_26 [1] : vector<16x128xf32> to vector<16xf32>
    %45 = vector.shape_cast %44 : vector<16xf32> to vector<16x1xf32>
    %cst_27 = arith.constant 1.000000e-24 : f32
    %46 = vector.broadcast %cst_27 : f32 to vector<16x1xf32>
    %47 = arith.maximumf %45, %46 : vector<16x1xf32>
    %48 = math.rsqrt %47 : vector<16x1xf32>
    %49 = vector.broadcast %48 : vector<16x1xf32> to vector<16x128xf32>
    %50 = arith.mulf %42, %49 : vector<16x128xf32>
    %c0_28 = arith.constant 0 : index
    %c0_29 = arith.constant 0 : index
    %c0_30 = arith.constant 0 : index
    %51 = vector.load %arg9[%c0_28, %c0_29, %c0_30] : memref<1x16x128xf32, #tpu.memory_space<vmem>>, vector<1x16x128xf32>
    %52 = vector.shape_cast %51 : vector<1x16x128xf32> to vector<16x128xf32>
    %53 = vector.shape_cast %50 : vector<16x128xf32> to vector<1x16x128xf32>
    tpu.vector_store %arg9[%c0_28, %c0_29, %c0_30], %53 {strides = array<i32>} : memref<1x16x128xf32, #tpu.memory_space<vmem>>, vector<1x16x128xf32>,
    return
  }
  func.func @transform_0(%arg0: i32) -> (i32, i32, i32) {
    %c0_i32 = arith.constant 0 : i32
    %c0_i32_0 = arith.constant 0 : i32
    %c0_i32_1 = arith.constant 0 : i32
    return %arg0, %c0_i32, %c0_i32_0 : i32, i32, i32
  }
  func.func @transform_1(%arg0: i32) -> (i32, i32, i32) {
    %c0_i32 = arith.constant 0 : i32
    %c0_i32_0 = arith.constant 0 : i32
    %c0_i32_1 = arith.constant 0 : i32
    return %arg0, %c0_i32, %c0_i32_0 : i32, i32, i32
  }
  func.func @transform_2(%arg0: i32) -> (i32, i32, i32) {
    %c0_i32 = arith.constant 0 : i32
    %c0_i32_0 = arith.constant 0 : i32
    %c0_i32_1 = arith.constant 0 : i32
    return %arg0, %c0_i32, %c0_i32_0 : i32, i32, i32
  }
  func.func @transform_3(%arg0: i32) -> (i32, i32, i32) {
    %c0_i32 = arith.constant 0 : i32
    %c0_i32_0 = arith.constant 0 : i32
    %c0_i32_1 = arith.constant 0 : i32
    return %arg0, %c0_i32, %c0_i32_0 : i32, i32, i32
  }
  func.func @transform_4(%arg0: i32) -> (i32, i32) {
    %c0_i32 = arith.constant 0 : i32
    %c0_i32_0 = arith.constant 0 : i32
    %c0_i32_1 = arith.constant 0 : i32
    return %c0_i32, %c0_i32_0 : i32, i32
  }
  func.func @transform_5(%arg0: i32) -> (i32, i32) {
    %c0_i32 = arith.constant 0 : i32
    %c0_i32_0 = arith.constant 0 : i32
    %c0_i32_1 = arith.constant 0 : i32
    return %c0_i32, %c0_i32_0 : i32, i32
  }
  func.func @transform_6(%arg0: i32) -> (i32, i32) {
    %c0_i32 = arith.constant 0 : i32
    %c0_i32_0 = arith.constant 0 : i32
    %c0_i32_1 = arith.constant 0 : i32
    return %c0_i32, %c0_i32_0 : i32, i32
  }
  func.func @transform_7(%arg0: i32) -> (i32, i32) {
    %c0_i32 = arith.constant 0 : i32
    %c0_i32_0 = arith.constant 0 : i32
    %c0_i32_1 = arith.constant 0 : i32
    return %c0_i32, %c0_i32_0 : i32, i32
  }
  func.func @transform_8(%arg0: i32) -> (i32, i32, i32) {
    %c0_i32 = arith.constant 0 : i32
    %c0_i32_0 = arith.constant 0 : i32
    %c0_i32_1 = arith.constant 0 : i32
    return %arg0, %c0_i32, %c0_i32_0 : i32, i32, i32
  }
}

</mosaic_0001>

<bundles_post_ra>
// kernel: tpu_custom_call.1
= control target key start
LH: loop header
LB: loop body
LE: loop exit
PB: predicated region body
PF: predicated region fallthrough
CT: control target
= control target key end

     0   :  { %13 = vsyncpa [#allocation3], 0  ;;  %s1661_s0 = inlined_call_operand.vmem [shape: f32[2,16,4], index: 0, kind: input, shape index: {}]   ;;  %s1662_s1 = inlined_call_operand.hbm [shape: bf16[2,16,16], index: 1, kind: input, shape index: {}]   ;;  %s1663_s2 = inlined_call_operand.vmem [shape: f32[2,16,1], index: 2, kind: input, shape index: {}]   ;;  %s1664_s3 = inlined_call_operand.vmem [shape: f32[2,16,1], index: 3, kind: input, shape index: {}]   ;;  %s1665_s4 = inlined_call_operand.hbm [shape: f32[4,128], index: 4, kind: input, shape index: {}]   ;;  %s1666_s5 = inlined_call_operand.vmem [shape: f32[1,128], index: 5, kind: input, shape index: {}]   ;;  %s1667_s6 = inlined_call_operand.vmem [shape: f32[128,128], index: 6, kind: input, shape index: {}]   ;;  %s1668_s7 = inlined_call_operand.vmem [shape: f32[1,128], index: 7, kind: input, shape index: {}]   ;;  %s1669_s8 = inlined_call_operand.hbm [shape: f32[2,16,128], index: 8, kind: output, shape index: {}]  }
   0x1   :  { %15 = vsyncpa [#allocation3 + $0x1], 0 }
   0x2   :  { %16 = vsyncpa [#allocation6], 0 }
   0x3   :  { %17 = vsyncpa [#allocation4], 0 }
   0x4   :  { %19 = vsyncpa [#allocation4 + $0x1], 0  ;;  %s1369_s27 = smov 0   ;;  %s1371_s28 = smov 0  }
   0x5   :  { %s1373_s29 = smov 0   ;;  %s1375_s30 = smov 0  }
   0x6 LB: > { %1678 = sst [smem:[#allocation11_spill]] %s1310_s29  ;;  %s1390_s9 = sadd.s32 4294967295, %s1314_s30   ;;  %s1314_s30 = sphi %s1375_s30, %s1697_s30   ;;  %s1310_s29 = sphi %s1373_s29, %s1699_s29   ;;  %s1306_s28 = sphi %s1371_s28, %s1701_s28   ;;  %s1302_s27 = sphi %s1369_s27, %s1700_s27  }
   0x7   : > { %s951_s10 = sadd.s32 4294967294, %s1314_s30   ;;  %s1394_s11 = sadd.s32 1, %s1314_s30  }
   0x8   : > { %1679 = sst [smem:[#allocation12_spill]] %s1394_s11  ;;  %s58_s12 = sadd.s32 1, %s1310_s29 }
   0x9   : > { %s55_s13 = ssub.s32 %s1314_s30, %s1394_s11  ;;  %p65_p0 = scmp.ne.s32.totalorder %s1310_s29, %s1306_s28 }
   0xa   : > { %p56_p1 = scmp.eq.s32.totalorder %s55_s13, 0  ;;  %p66_p2 = scmp.eq.s32.totalorder %s1314_s30, 0 }
   0xb   : > { %p71_p3 = scmp.ne.s32.totalorder %s1306_s28, %s1302_s27  ;;  %p1670_p4 = scmp.eq.s32.totalorder %s1390_s9, 0 }
   0xc   : > { %s1406_s14 = scalar_select %p56_p1, %s1310_s29, %s58_s12  }
   0xd   : > { %p1408_p5 = por %p66_p2, %p65_p0  ;;  %p1414_p6 = por %p1670_p4, %p71_p3 }
   0xe   : > { %1680 = sst [smem:[#allocation13_spill]] %s1406_s14  ;;  %p231_p7 = scmp.eq.s32.totalorder %s1390_s9, 1 }
   0xf   : > { %s1682_s16 = scalar_select %p1414_p6, 1, 0 }
  0x10   : > { %p237_p8 = scmp.eq.s32.totalorder %s951_s10, 1  ;;  %p952_p9 = scmp.ge.s32.totalorder %s1314_s30, 1 }
  0x11   : > { %p244_p10 = scmp.lt.s32.totalorder %s1314_s30, 3  ;;  %p1421_p11 = por %p231_p7, %p65_p0 }
  0x12   : > { %p1425_p12 = por %p237_p8, %p71_p3  ;;  %s1316_s20 = smov [#allocation5]  }
  0x13   : > { %s1683_s17 = scalar_select %p1421_p11, 1, 0 }
  0x14   : > { %s1684_s18 = scalar_select %p1425_p12, 1, 0 }
  0x15   : > { %p1429_p13 = pnand %p952_p9, %p244_p10  ;;  %s257_s21 = sshll.u32 %s1316_s20, 4  ;;  %s258_s21 = int_to_ptr.vmem [resolvable:$true] %s257_s21 }
  0x16   : > { %p1135_p4 = scmp.lt.s32.totalorder %s1314_s30, 2  ;;  %p1686_p0 = scmp.eq.s32.totalorder %s1390_s9, 0 }
  0x17   : > { %s1685_s19 = scalar_select %p1429_p13, 1, 0 }
  0x18   : > { %p1122_p2 = pneg %p1429_p13  ;;  %s285_s23 = sand.u32 1, %s1310_s29  }
  0x19   : > { %p1446_p3 = pnand %p1135_p4, %p1408_p5  ;;  %s955_s25 = sshll.u32 %s285_s23, 3 }
  0x1a   : > { %p1439_p7 = pnand %p1122_p2, %p1686_p0  ;;  %s1186_s12 = scalar_lea.hbm %s1665_s4, 64 }
  0x1b   : > { %s1688_s24 = scalar_select %p1446_p3, 1, 0 }
  0x1c   : > { %p1187_p8 = scmp.ne.s32.totalorder %s1665_s4, %s1186_s12  ;;  %p1188_p9 = pneg %p1439_p7 }
  0x1d   : > { %p1193_p4 = scmp.lt.u32.totalorder %s1186_s12, %s1665_s4 }
  0x1e   : > { %p1189_p10 = pnand %p1188_p9, %p1187_p8 }
  0x20   : > { %p1190_p2 = pneg %p1189_p10 }
  0x22   : > { %p1195_p5 = pnand %p1193_p4, %p1190_p2 }
  0x24   : > { %1198 = shalt.err (!%p1195_p5)
}
  0x25   : > { %s1199_s15 = scalar_lea.vmem %s258_s21, 64  ;;  %p1207_p11 = scmp.lt.s32.totalorder %s258_s21, %s258_s21 }
  0x26   : > { %p1200_p0 = scmp.ne.s32.totalorder %s258_s21, %s1199_s15  ;;  %p1208_p6 = scmp.lt.s32.totalorder %s1199_s15, %s1199_s15 }
  0x28   : > { %p1202_p1 = pnand %p1200_p0, %p1188_p9  ;;  %p1209_p13 = por %p1208_p6, %p1207_p11 }
  0x2a   : > { %p1203_p12 = pneg %p1202_p1 }
  0x2c   : > { %p1210_p3 = pnand %p1209_p13, %p1203_p12 }
  0x2e   : > { %1213 = shalt.err (!%p1210_p3)
}
  0x2f   : > { %1125 = dma.hbm_to_vmem [thread:$0]  (!%p1439_p7), %s1665_s4, 64, %s258_s21, [#allocation6]  }
  0x30   : > { %s982_s29 = sshll.u32 %s1314_s30, 7  ;;  %s289_s14 = scalar_lea.vmem [#allocation2], %s955_s25 }
  0x31   : > { %s296_s12 = sshll.u32 %s289_s14, 4  ;;  %s1470_s11 = scalar_lea.hbm %s1662_s1, %s982_s29  ;;  %s1472_s12 = int_to_ptr.vmem [resolvable:$true] %s296_s12 }
  0x32   : > { %s1474_s22 = scalar_lea.sflag [#allocation3], %s285_s23  ;;  %s1214_s15 = scalar_lea.hbm %s1470_s11, 128 }
  0x33   : > { %p1215_p6 = scmp.ne.s32.totalorder %s1470_s11, %s1214_s15  ;;  %p1689_p11 = scmp.ne.s32.totalorder %s1688_s24, 0 }
  0x34   : > { %s1219_s26 = scalar_lea.hbm %s1662_s1, 256  ;;  %p1220_p7 = scmp.lt.u32.totalorder %s1470_s11, %s1662_s1 }
  0x35   : > { %p1216_p12 = pneg %p1689_p11  ;;  %p1221_p3 = scmp.lt.u32.totalorder %s1219_s26, %s1214_s15 }
  0x36   : > { %p1223_p9 = scmp.lt.u32.totalorder %s1214_s15, %s1470_s11 }
  0x37   : > { %p1217_p13 = pnand %p1216_p12, %p1215_p6  ;;  %p1222_p8 = por %p1221_p3, %p1220_p7 }
  0x39   : > { %p1218_p1 = pneg %p1217_p13  ;;  %p1224_p10 = por %p1223_p9, %p1222_p8 }
  0x3b   : > { %p1225_p2 = pnand %p1224_p10, %p1218_p1 }
  0x3d   : > { %1228 = shalt.err (!%p1225_p2)
}
  0x3e   : > { %s1229_s23 = scalar_lea.vmem %s1472_s12, 128  ;;  %s1317_s14 = smov [#allocation2]  }
  0x3f   : > { %p1230_p4 = scmp.ne.s32.totalorder %s1472_s12, %s1229_s23  ;;  %s1234_s13 = sshll.u32 %s1317_s14, 4  ;;  %s1235_s13 = int_to_ptr.vmem [resolvable:$false] %s1234_s13 }
  0x40   : > { %s1236_s20 = scalar_lea.vmem %s1235_s13, 256  ;;  %p1237_p6 = scmp.lt.s32.totalorder %s1472_s12, %s1235_s13 }
  0x41   : > { %p1232_p5 = pnand %p1230_p4, %p1216_p12  ;;  %p1238_p13 = scmp.lt.s32.totalorder %s1236_s20, %s1229_s23 }
  0x43   : > { %p1233_p0 = pneg %p1232_p5  ;;  %p1239_p7 = por %p1238_p13, %p1237_p6 }
  0x45   : > { %p1240_p3 = pnand %p1239_p7, %p1233_p0 }
  0x47   : > { %1243 = shalt.err (!%p1240_p3)
}
  0x48   : > { %s1318_s15 = smov 64   ;;  %s1319_s21 = smov 4  }
  0x49   : > { %1129 = dma.hbm_to_vmem [thread:$0]  (!%p1689_p11), %s1470_s11, 128, %s1472_s12, %s1474_s22, %s1318_s15, %s1318_s15, %s1319_s21  }
  0x4a   : > { %p1690_p12 = scmp.ne.s32.totalorder %s1685_s19, 0 }
  0x4b   : > { %s1505_s25 = sand.u32 (!%p1690_p12), 1, %s1306_s28   ;;  %p1691_p1 = scmp.ne.s32.totalorder (!%p1690_p12), %s1682_s16, 0 }
  0x4c   : > { %324 = sbr.rel (%p1690_p12) target bundleno = 1313 (0x521), region = 52  ;;  %s959_s26 = sshll.u32 (!%p1690_p12), %s1505_s25, 3 }
  0x4d   : > { %s327_s10 = scalar_lea.sflag (!%p1690_p12), [#allocation3], %s1505_s25  ;;  %s330_s29 = scalar_lea.vmem (!%p1690_p12), [#allocation2], %s959_s26 }
  0x53   : > { %1289 = dma.done.wait (%p1691_p1), %s327_s10, 128  }
  0x54   : > { %1291 = vsyncadd (%p1691_p1), %s327_s10, 4294967168  ;;  %p1692_p8 = scmp.eq.s32.totalorder %s1390_s9, 0 }
  0x56   : > { %1293 = dma.done.wait (%p1692_p8), [#allocation6], 64   ;;  %p1693_p11 = pmov %p1692_p8 }
  0x57   : > { %p382_p9 = scmp.lt.s32.totalorder %s1390_s9, 1  ;;  %v1320_v0 = vmov 0   ;;  %v1525_v3 = vld [vmem:[%s330_s29] sm:$0xff]   ;;  %vm426_vm0 = vcmask 130048   ;;  %v397_v11 = vld [vmem:[#allocation5] sm:$0xf] }
  0x58   : > { %1295 = vsyncadd (%p1693_p11), [#allocation6], 4294967232  ;;  %1176 = vset.pattern.permute.xlu0 %v1320_v0  ;;  %1177 = vset.pattern.permute.xlu1 %v1320_v0  ;;  %v989_v5 = vunpack.c.l.bf16 %v1525_v3  ;;  %v990_v8 = vunpack.c.h.bf16 %v1525_v3  ;;  %vm547_vm1 = vcmask 1043456   ;;  %vm540_vm2 = vcmask 31744   ;;  %v970_v24 = vld [vmem:[%s1666_s5] ss:$0 sm:$0xff] }
  0x59   : > { %s383_s11 = scalar_select %p382_p9, %s1390_s9, 1  ;;  %v399_v33 = vld [vmem:[%s1667_s6] sm:$0xff]  ;;  %v400_v34 = vld [vmem:[%s1667_s6 + $0x8] sm:$0xff]  ;;  %v401_v35 = vld [vmem:[%s1667_s6 + $0x10] sm:$0xff] }
  0x5a   : > { %1024 = vmatprep.mubr.msk.f32.mxu1 %vm426_vm0, %v989_v5  ;;  %v1082_v36 = vpack.c.bf16 %v400_v34, %v399_v33  ;;  %v402_v37 = vld [vmem:[%s1667_s6 + $0x18] sm:$0xff]  ;;  %v403_v39 = vld [vmem:[%s1667_s6 + $0x20] sm:$0xff]  ;;  %v404_v40 = vld [vmem:[%s1667_s6 + $0x28] sm:$0xff]  ;;  %s961_s24 = sshll.u32 %s1505_s25, 4  ;;  %s986_s12 = sshll.u32 %s1390_s9, 8 }
  0x5b   : > { %s983_s19 = sshll.u32 %s383_s11, 4  ;;  %v1086_v38 = vpack.c.bf16 %v402_v37, %v401_v35  ;;  %v1090_v41 = vpack.c.bf16 %v404_v40, %v403_v39  ;;  %v405_v42 = vld [vmem:[%s1667_s6 + $0x30] sm:$0xff]  ;;  %v406_v43 = vld [vmem:[%s1667_s6 + $0x38] sm:$0xff]  ;;  %v407_v45 = vld [vmem:[%s1667_s6 + $0x40] sm:$0xff]  ;;  %s1615_s13 = scalar_lea.hbm %s1669_s8, %s986_s12 }
  0x5c   : > { %s386_s22 = scalar_lea.vmem %s1661_s0, %s983_s19  ;;  %s391_s14 = scalar_lea.vmem %s1663_s2, %s983_s19  ;;  %1083 = vmatprep.subr.bf16.mxu0 %v1082_v36  ;;  %v1094_v44 = vpack.c.bf16 %v406_v43, %v405_v42  ;;  %v408_v46 = vld [vmem:[%s1667_s6 + $0x48] sm:$0xff]  ;;  %v409_v48 = vld [vmem:[%s1667_s6 + $0x50] sm:$0xff]  ;;  %v410_v49 = vld [vmem:[%s1667_s6 + $0x58] sm:$0xff] }
  0x5d   : > { %v424_v1 = vld [vmem:[%s386_s22] sm:$0xff]  ;;  %v425_v2 = vld [vmem:[%s386_s22 + $0x8] sm:$0xff]  ;;  %s396_s15 = scalar_lea.vmem %s1664_s3, %s983_s19  ;;  %1085 = vmatpush3.bf16.msra.mxu0 %v1082_v36  ;;  %v1098_v47 = vpack.c.bf16 %v408_v46, %v407_v45  ;;  %v1102_v50 = vpack.c.bf16 %v410_v49, %v409_v48  ;;  %v413_v63 = vld [vmem:[%s1667_s6 + $0x70] sm:$0xff]  ;;  %s381_s22 = scalar_lea.vmem [#allocation7], %s961_s24 }
  0x5e   : > { %v1074_v4 = vpack.c.bf16 %v425_v2, %v424_v1  ;;  %v420_v6 = vld [vmem:[%s391_s14] sm:$0xff]  ;;  %v421_v7 = vld [vmem:[%s391_s14 + $0x8] sm:$0xff]  ;;  %1087 = vmatprep.subr.bf16.mxu0 %v1086_v38  ;;  %v414_v0 = vld [vmem:[%s1667_s6 + $0x78] sm:$0xff]  ;;  %s832_s16 = sshll.u32 %s381_s22, 4  ;;  %s819_s20 = scalar_lea.sflag [#allocation4], %s1505_s25  ;;  %s1617_s16 = int_to_ptr.vmem [resolvable:$true] %s832_s16 }
  0x5f   : > { %510 = vperm.xlu0 %1176, %v420_v6   ;;  %515 = vperm.xlu1 %1177, %v421_v7   ;;  %v422_v9 = vld [vmem:[%s396_s15] sm:$0xff]  ;;  %v423_v10 = vld [vmem:[%s396_s15 + $0x8] sm:$0xff]  ;;  %s1244_s15 = scalar_lea.vmem %s1617_s16, 256  ;;  %p1694_p2 = scmp.ne.s32.totalorder %s1683_s17, 0 }
  0x60   : > { %1075 = vmatprep.subr.bf16.mxu1 %v1074_v4  ;;  %v411_v51 = vld [vmem:[%s1667_s6 + $0x60] sm:$0xff]  ;;  %v412_v52 = vld [vmem:[%s1667_s6 + $0x68] sm:$0xff]  ;;  %p1245_p10 = scmp.ne.s32.totalorder %s1617_s16, %s1244_s15  ;;  %s1321_s9 = smov [#allocation7]  }
  0x61   : > { %1077 = vmatpush3.bf16.msra.mxu1 %v1074_v4  ;;  %1089 = vmatpush3.bf16.msra.mxu0 %v1086_v38  ;;  %v1106_v53 = vpack.c.bf16 %v412_v52, %v411_v51  ;;  %s1248_s21 = sshll.u32 %s1321_s9, 4  ;;  %s1249_s21 = int_to_ptr.vmem [resolvable:$false] %s1248_s21 }
  0x62   : > { %1027 = vmatprep.subr.msk.mxu1 %vm547_vm1, %v397_v11  ;;  %1091 = vmatprep.subr.bf16.mxu0 %v1090_v41  ;;  %p1246_p4 = pnand %p1245_p10, %p1694_p2  ;;  %s1250_s26 = scalar_lea.vmem %s1249_s21, 512 }
  0x63   : > { %522 = vperm.xlu0 %1176, %v422_v9   ;;  %527 = vperm.xlu1 %1177, %v423_v10   ;;  %v976_v10 = vld [vmem:[%s1668_s7] ss:$0 sm:$0xff]  ;;  %p1251_p0 = scmp.lt.s32.totalorder %s1617_s16, %s1249_s21  ;;  %p1252_p6 = scmp.lt.s32.totalorder %s1250_s26, %s1244_s15 }
  0x64   : > { %1025 = vmatmul.mubr.msk.f32.vlgmr.msra.gmra.mrb[0].mxu1 %vm426_vm0, %v990_v8  ;;  %p1247_p5 = pneg %p1246_p4 }
  0x65   : > { %1028 = vmatpush3.msk.msra.mxu1 %vm547_vm1, %v397_v11  ;;  %1093 = vmatpush3.bf16.msra.mxu0 %v1090_v41  ;;  %p1253_p13 = por %p1252_p6, %p1251_p0 }
  0x66   : > { %1095 = vmatprep.subr.bf16.mxu0 %v1094_v44 }
  0x67   : > { %p1254_p7 = pnand %p1253_p13, %p1247_p5 }
  0x69   : > { %1097 = vmatpush3.bf16.msra.mxu0 %v1094_v44 }
  0x6a   : > { %1099 = vmatprep.subr.bf16.mxu0 %v1098_v47 }
  0x6d   : > { %1101 = vmatpush3.bf16.msra.mxu0 %v1098_v47 }
  0x6e   : > { %1103 = vmatprep.subr.bf16.mxu0 %v1102_v50 }
  0x71   : > { %1105 = vmatpush3.bf16.msra.mxu0 %v1102_v50 }
  0x72   : > { %1107 = vmatprep.subr.bf16.mxu0 %v1106_v53 }
  0x75   : > { %1109 = vmatpush3.bf16.msra.mxu0 %v1106_v53 }
  0xde   : > { %v1536_v12 = vpop.permute.xlu0 %510  ;;  %v1538_v13 = vpop.permute.xlu1 %515 }
  0xe2   : > { %v1540_v14 = vpop.permute.xlu0 %522  ;;  %v1542_v15 = vpop.permute.xlu1 %527 }
  0xe3   : > { %v530_v19 = vmul.f32 %v1540_v14, %v424_v1  ;;  %v531_v21 = vmul.f32 %v1542_v15, %v425_v2  ;;  %v1110_v1 = vpack.c.bf16 %v414_v0, %v413_v63 }
  0xe5   : > { %1111 = vmatprep.subr.bf16.mxu0 %v1110_v1 }
  0xe6   : > { %1113 = vmatpush3.bf16.msra.mxu0 %v1110_v1 }
 0x137   : > { %v1026_v16 = vpop.f32.mrb[0].mxu1 }
 0x138   : > { %v519_v17 = vmul.f32 %v1026_v16, %v1538_v13  ;;  %v499_v18 = vpop.f32.mrb[1].mxu1 }
 0x139   : > { %v518_v20 = vmul.f32 %v1536_v12, %v499_v18 }
 0x13a   : > { %v533_v23 = vadd.f32 %v531_v21, %v519_v17 }
 0x13b   : > { %v532_v22 = vadd.f32 %v530_v19, %v518_v20 }
 0x13d   : > { %1029 = vmatprep.mubr.msk.f32.mxu1 %vm540_vm2, %v532_v22 }
 0x13e   : > { %1030 = vmatmul.mubr.msk.f32.vlgmr.msra.gmra.mrb[2].mxu1 %vm540_vm2, %v533_v23 }
 0x13f   : > { %1036 = vmatprep.mubr.msk.f32.mxu1 %vm426_vm0, %v989_v5 }
 0x211   : > { %v1031_v25 = vpop.f32.mrb[2].mxu1 }
 0x212   : > { %v623_v26 = vadd.f32 %v1031_v25, %v970_v24  ;;  %v617_v27 = vpop.f32.mrb[3].mxu1 }
 0x213   : > { %v618_v28 = vadd.f32 %v970_v24, %v617_v27 }
 0x214   : > { %v627_v29 = vmax.f32 %v623_v26, 0.0 }
 0x215   : > { %v626_v30 = vmax.f32 %v618_v28, 0.0 }
 0x216   : > { %v629_v31 = vmul.f32 %v627_v29, %v627_v29 }
 0x217   : > { %v628_v32 = vmul.f32 %v626_v30, %v626_v30 }
 0x218   : > { %632 = vadd.xlane.f32.xlu1 %v629_v31 }
 0x219   : > { %630 = vadd.xlane.f32.xlu0 %v628_v32 }
 0x2a5   : > { %v633_v54 = vpop.xlane.xlu1 %632 }
 0x2a6   : > { %v635_v55 = vmax.f32 %v633_v54, 1e-24  ;;  %v631_v56 = vpop.xlane.xlu0 %630 }
 0x2a7   : > { %v634_v57 = vmax.f32 %v631_v56, 1e-24 }
 0x2a8   : > { %1178 = vrsqrt.f32 %v635_v55 }
 0x2a9   : > { %1180 = vrsqrt.f32 %v634_v57 }
 0x2b2   : > { %v1179_v58 = vpop.eup %1178 }
 0x2b3   : > { %v1181_v59 = vpop.eup %1180  ;;  %v639_v60 = vmul.f32 %v1179_v58, %v627_v29 }
 0x2b4   : > { %v638_v61 = vmul.f32 %v1181_v59, %v626_v30 }
 0x2b5   : > { %v718_v5 = vmul.f32 %v639_v60, %v1542_v15 }
 0x2b6   : > { %v1078_v62 = vpack.c.bf16 %v639_v60, %v638_v61  ;;  %v717_v7 = vmul.f32 %v638_v61, %v1540_v14 }
 0x2b8   : > { %1079 = vmatprep.subr.bf16.mxu1 %v1078_v62 }
 0x2b9   : > { %1081 = vmatpush3.bf16.msra.mxu1 %v1078_v62 }
 0x2bc   : > { %1037 = vmatmul.mubr.msk.f32.vlgmr.msra.gmra.mrb[4].mxu1 %vm426_vm0, %v990_v8 }
 0x38f   : > { %v1038_v2 = vpop.f32.mrb[4].mxu1 }
 0x390   : > { %v716_v4 = vmul.f32 %v1038_v2, %v1538_v13  ;;  %v706_v6 = vpop.f32.mrb[5].mxu1 }
 0x391   : > { %v715_v3 = vmul.f32 %v706_v6, %v1536_v12 }
 0x392   : > { %v720_v8 = vadd.f32 %v718_v5, %v716_v4 }
 0x393   : > { %v719_v9 = vadd.f32 %v717_v7, %v715_v3 }
 0x395   : > { %1071 = vmatprep.mubr.f32.mxu0 %v719_v9 }
 0x396   : > { %1072 = vmatmul.mubr.f32.vlgmr.msra.gmra.mrb[0].mxu0 %v720_v8 }
 0x469   : > { %v1073_v11 = vpop.f32.mrb[0].mxu0 }
 0x46a   : > { %v793_v16 = vpop.f32.mrb[1].mxu0  ;;  %v799_v17 = vadd.f32 %v1073_v11, %v976_v10 }
 0x46b   : > { %v794_v13 = vadd.f32 %v976_v10, %v793_v16 }
 0x46c   : > { %v803_v18 = vmax.f32 %v799_v17, 0.0 }
 0x46d   : > { %v802_v15 = vmax.f32 %v794_v13, 0.0 }
 0x46e   : > { %v805_v12 = vmul.f32 %v803_v18, %v803_v18 }
 0x46f   : > { %v804_v19 = vmul.f32 %v802_v15, %v802_v15 }
 0x471   : > { %806 = vadd.xlane.f32.xlu0 %v804_v19 }
 0x475   : > { %808 = vadd.xlane.f32.xlu0 %v805_v12 }
 0x4fe   : > { %v807_v14 = vpop.xlane.xlu0 %806 }
 0x4ff   : > { %v810_v20 = vmax.f32 %v807_v14, 1e-24 }
 0x501   : > { %1182 = vrsqrt.f32 %v810_v20 }
 0x502   : > { %v809_v21 = vpop.xlane.xlu0 %808 }
 0x503   : > { %v811_v22 = vmax.f32 %v809_v21, 1e-24 }
 0x505   : > { %1184 = vrsqrt.f32 %v811_v22 }
 0x50b   : > { %v1183_v23 = vpop.eup %1182 }
 0x50c   : > { %v814_v24 = vmul.f32 %v1183_v23, %v802_v15 }
 0x50e   : > { %816 = vst [vmem:[%s381_s22] sm:$0xff] %v814_v24 }
 0x50f   : > { %v1185_v25 = vpop.eup %1184 }
 0x510   : > { %v815_v26 = vmul.f32 %v1185_v25, %v803_v18 }
 0x512   : > { %817 = vst [vmem:[%s381_s22 + $0x8] sm:$0xff] %v815_v26 }
 0x513   : > { %1257 = shalt.err (!%p1254_p7)
}
 0x514   : > { %s1258_s10 = scalar_lea.hbm %s1615_s13, 256  ;;  %s1262_s19 = scalar_lea.hbm %s1669_s8, 512 }
 0x515   : > { %p1259_p3 = scmp.ne.s32.totalorder %s1615_s13, %s1258_s10  ;;  %p1263_p8 = scmp.lt.u32.totalorder %s1615_s13, %s1669_s8 }
 0x516   : > { %p1264_p11 = scmp.lt.u32.totalorder %s1262_s19, %s1258_s10  ;;  %p1266_p10 = scmp.lt.u32.totalorder %s1258_s10, %s1615_s13 }
 0x517   : > { %p1260_p12 = pnand %p1259_p3, %p1694_p2 }
 0x518   : > { %p1265_p9 = por %p1264_p11, %p1263_p8 }
 0x519   : > { %p1261_p1 = pneg %p1260_p12 }
 0x51a   : > { %p1267_p4 = por %p1266_p10, %p1265_p9 }
 0x51c   : > { %p1268_p5 = pnand %p1267_p4, %p1261_p1 }
 0x51e   : > { %1271 = shalt.err (!%p1268_p5)
}
 0x51f   : > { %s1322_s22 = smov 128   ;;  %s1323_s23 = smov 8  }
 0x520   : > { %1120 = dma.vmem_to_hbm [thread:$0]  (%p1694_p2), %s1617_s16, 256, %s1615_s13, %s819_s20, %s1322_s22, %s1322_s22, %s1323_s23  }
 0x521 PF: > { %s847_s14 = sand.u32 1, %s1302_s27   ;;  %p1695_p0 = scmp.ne.s32.totalorder %s1684_s18, 0 }
 0x522   : > { %p1696_p6 = scmp.ge.s32.totalorder %s1314_s30, 2  ;;  %s848_s15 = scalar_lea.sflag [#allocation4], %s847_s14 }
 0x524   : > { %p1131_p13 = pnand %p1696_p6, %p1695_p0 }
 0x526   : > { %1297 = dma.done.wait (!%p1131_p13), %s848_s15, 256  }
 0x527   : > { %1299 = vsyncadd (!%p1131_p13), %s848_s15, 4294967040  ;;  %s1697_s30 = sld [smem:[#allocation12_spill]]  ;;  %s1698_s9 = sld [smem:[#allocation11_spill]] }
 0x528   : > { %s1699_s29 = sld [smem:[#allocation13_spill]]  ;;  %s1700_s27 = smov %s1306_s28 }
 0x52d   : > { %p22_p7 = scmp.ge.s32.totalorder %s1697_s30, 4   ;;  %s1701_s28 = smov %s1698_s9 }
 0x52f   :  { %24 = sbr.rel (!%p22_p7) target bundleno = 6 (0x6), region = 110 }
 0x536   :  { %853 = vsyncpa [#allocation3], 1 }
 0x537   :  { %855 = vsyncpa [#allocation3 + $0x1], 1 }
 0x538   :  { %856 = vsyncpa [#allocation6], 1 }
 0x539   :  { %857 = vsyncpa [#allocation4], 1 }
 0x53a   :  { %859 = vsyncpa [#allocation4 + $0x1], 1 }

</bundles_post_ra>
